<compile_context>
chip_gen: v7x
topology: tpu7x:2x2x1
jax: 0.10.0
libtpu: 0.0.40
codegen_flags: <defaults>
</compile_context>

<pallas_src>
import functools

import jax
import jax.numpy as jnp
from jax.experimental import pallas as pl
from jax.experimental.pallas import tpu as pltpu

_LANE = 128
_SUBLANE = 8
_MAX_TILE_ROWS = 512                 # measured sweet spot for row tiles
_VMEM_LIMIT = 48 * 1024 * 1024       # stays under v7x's 64 MiB physical VMEM


def _round_up(x, m):
    return (x + m - 1) // m * m


def _pick_tile(dim, align, max_tile):
    """Largest multiple of `align` that divides `dim` and is <= max_tile.

    Falls back to the full dimension (always a legal block size)."""
    cap = min(max_tile, dim)
    t = (cap // align) * align
    while t >= align:
        if dim % t == 0:
            return t
        t -= align
    return dim


# ----------------------------- kNN kernel ------------------------------------
def _knn_kernel(xq_ref, x_ref, idx_ref, *, k):
    xq = xq_ref[0].astype(jnp.float32)           # (C, TQ) query slab
    xa = x_ref[0].astype(jnp.float32)            # (C, N)  all points
    tq = xq.shape[1]
    n = xa.shape[1]
    # torch: pairwise = -||xi||^2 + 2<xi,xj> - ||xj||^2 ; topk over j.
    # -||xi||^2 is constant per query row -> drop it (does not change indices).
    gram = jax.lax.dot_general(xq, xa, (((0,), (0,)), ((), ())),
                               preferred_element_type=jnp.float32)  # (TQ, N)
    xx = jnp.sum(xa * xa, axis=0, keepdims=True)                    # (1, N)
    score = 2.0 * gram - xx
    col = jax.lax.broadcasted_iota(jnp.int32, (tq, n), 1)
    kcol = jax.lax.broadcasted_iota(jnp.int32, (tq, k), 1)
    idx_acc = jnp.zeros((tq, k), jnp.int32)
    for j in range(k):                           # k is small & static
        m = jnp.max(score, axis=1, keepdims=True)
        amax = jnp.min(jnp.where(score == m, col, n), axis=1, keepdims=True)
        idx_acc = jnp.where(kcol == j, amax, idx_acc)
        score = jnp.where(col == amax, jnp.float32(-3e38), score)
    idx_ref[0] = idx_acc


def knn_pallas(x, k):
    b, c, n = x.shape
    # Keep the (tq, n) f32 score slab (and its few live temporaries) VMEM-safe.
    cap = max(_LANE, (4 * 1024 * 1024) // max(4 * n, 1) // _LANE * _LANE)
    tq = _pick_tile(n, _LANE, min(_MAX_TILE_ROWS, cap))
    num_q = n // tq
    return pl.pallas_call(
        functools.partial(_knn_kernel, k=k),
        grid=(b, num_q),
        in_specs=[
            pl.BlockSpec((1, c, tq), lambda bi, qi: (bi, 0, qi)),   # query slab
            pl.BlockSpec((1, c, n), lambda bi, qi: (bi, 0, 0)),     # all points
        ],
        out_specs=pl.BlockSpec((1, tq, k), lambda bi, qi: (bi, qi, 0)),
        out_shape=jax.ShapeDtypeStruct((b, n, k), jnp.int32),
        compiler_params=pltpu.CompilerParams(
            dimension_semantics=("parallel", "parallel"),
            vmem_limit_bytes=_VMEM_LIMIT),
    )(x, x)


# ------- row-tiled stage: [BN scale/shift + LeakyReLU] -> matmul -> stats -----
def _stage_kernel(*refs, norm_act, neg_slope, want_stats):
    if norm_act:
        x_ref, scale_ref, shift_ref, w_ref = refs[:4]
        out_refs = refs[4:]
    else:
        x_ref, w_ref = refs[:2]
        out_refs = refs[2:]
    y = x_ref[...]
    if norm_act:
        # previous layer's BatchNorm folded into per-channel scale/shift
        y = y.astype(jnp.float32) * scale_ref[...] + shift_ref[...]
        y = jnp.where(y > 0, y, neg_slope * y)            # LeakyReLU(0.2)
    # 1x1 Conv2d (bias=False) == matmul over channels on the MXU
    z = jnp.dot(y.astype(w_ref.dtype), w_ref[...],
                preferred_element_type=jnp.float32)
    out_refs[0][...] = z
    if want_stats:
        # one-pass per-channel partial stats (sum, sum of squares) for the tile
        s1 = jnp.sum(z, axis=0, keepdims=True)
        s2 = jnp.sum(z * z, axis=0, keepdims=True)
        out_refs[1][...] = jnp.concatenate([s1, s2], axis=0)[None]


def _mlp_stage(cur, wp, scale=None, shift=None, *, norm_act, neg_slope,
               m_tile, want_stats):
    m, cin_p = cur.shape
    cout_p = wp.shape[1]
    num_tiles = m // m_tile

    in_specs = [pl.BlockSpec((m_tile, cin_p), lambda i: (i, 0))]
    args = [cur]
    if norm_act:
        in_specs += [pl.BlockSpec((1, cin_p), lambda i: (0, 0)),
                     pl.BlockSpec((1, cin_p), lambda i: (0, 0))]
        args += [scale, shift]
    in_specs += [pl.BlockSpec((cin_p, cout_p), lambda i: (0, 0))]  # weights resident
    args += [wp]

    out_specs = [pl.BlockSpec((m_tile, cout_p), lambda i: (i, 0))]
    out_shape = [jax.ShapeDtypeStruct((m, cout_p), jnp.float32)]
    if want_stats:
        out_specs += [pl.BlockSpec((1, 2, cout_p), lambda i: (i, 0, 0))]
        out_shape += [jax.ShapeDtypeStruct((num_tiles, 2, cout_p), jnp.float32)]

    res = pl.pallas_call(
        functools.partial(_stage_kernel, norm_act=norm_act,
                          neg_slope=neg_slope, want_stats=want_stats),
        grid=(num_tiles,),
        in_specs=in_specs,
        out_specs=out_specs,
        out_shape=out_shape,
        compiler_params=pltpu.CompilerParams(
            dimension_semantics=("parallel",),
            vmem_limit_bytes=_VMEM_LIMIT),
    )(*args)
    if want_stats:
        return res[0], res[1]
    return res[0], None


def _fold_bn(gsum, gsumsq, m, gamma, beta, cout, cout_p, eps):
    """Training-mode BatchNorm2d (biased batch var) folded to scale/shift."""
    mean = gsum / m
    var = jnp.maximum(gsumsq / m - mean * mean, 0.0)
    inv = jax.lax.rsqrt(var + eps)
    gp = jnp.pad(gamma, ((0, 0), (0, cout_p - cout)))
    bp = jnp.pad(beta, ((0, 0), (0, cout_p - cout)))
    scale = (gp * inv.reshape(1, -1)).astype(jnp.float32)          # (1, cout_p)
    shift = (bp - mean.reshape(1, -1) * scale).astype(jnp.float32)  # (1, cout_p)
    return scale, shift


# ----------- final kernel: last BN + LeakyReLU + max over K neighbors ---------
def _final_max_kernel(z_ref, scale_ref, shift_ref, o_ref, *, neg_slope):
    y = z_ref[0] * scale_ref[...] + shift_ref[...]
    y = jnp.where(y > 0, y, neg_slope * y)
    kk = pl.program_id(2)

    @pl.when(kk == 0)
    def _():
        o_ref[0] = y

    @pl.when(kk != 0)
    def _():
        o_ref[0] = jnp.maximum(o_ref[0], y)


# ------------------------------ wrapper ---------------------------------------
def dgcnn_layer_forward(x, params, knn_num, *, idx=None, eps=1e-5,
                        negative_slope=0.2, compute_dtype=jnp.float32):
    """x: (B, C, N) float32. Returns (B, C_out, N) like the PyTorch module.

    compute_dtype=jnp.bfloat16 can be used on v6e/v7x to double MXU throughput
    for the 1x1-conv matmuls (BN statistics / normalization stay in float32).
    """
    b, c, n = x.shape
    num_layers = len(params) // 3

    # ---- kNN indices (Pallas) ---------------------------------------------
    if idx is None:
        k = knn_num
        idx = knn_pallas(x, k)                              # (B, N, K) int32
    else:
        k = idx.shape[2]
    m = b * k * n

    # ---- layer 0: edge-feature 1x1 conv, decomposed -------------------------
    #   cat(x[nbr]-x[n], x[n]) @ W0 == x[nbr] @ Wn + x[n] @ (Wc - Wn)
    # -> matmul over B*N point rows (K x fewer MXU flops than edge rows) and
    #    the (B, K, N, 2C) edge tensor is never materialized in HBM.
    w0, gamma0, beta0 = params[0:3]
    c1 = w0.shape[1]
    c1_p = _round_up(c1, _LANE)
    c_p = _round_up(c, _LANE)
    wn = jnp.pad(w0[:c, :], ((0, c_p - c), (0, c1_p - c1)))
    wm = jnp.pad(w0[c:, :] - w0[:c, :], ((0, c_p - c), (0, c1_p - c1)))
    wcat = jnp.concatenate([wn, wm], axis=1).astype(compute_dtype)  # (C_p, 2*c1_p)

    x_t = jnp.transpose(x, (0, 2, 1))                       # (B, N, C)
    x_rows = jnp.pad(x_t.reshape(b * n, c),
                     ((0, 0), (0, c_p - c))).astype(compute_dtype)
    m0_tile = _pick_tile(b * n, _SUBLANE, _MAX_TILE_ROWS)
    proj, _ = _mlp_stage(x_rows, wcat, norm_act=False,
                         neg_slope=negative_slope, m_tile=m0_tile,
                         want_stats=False)
    proj = proj.reshape(b, n, 2 * c1_p)
    pn = proj[:, :, :c1_p]                                  # x @ Wn
    pcm = proj[:, :, c1_p:]                                 # x @ (Wc - Wn)

    # data-dependent neighbor gather on the projected, lane-padded rows.
    # TODO(synk): a scalar-prefetch / manual-DMA gather kernel fused with the
    # next stage would remove one HBM round trip of z0.
    idx_t = jnp.transpose(idx, (0, 2, 1))                   # (B, K, N) tiny
    neigh = jax.vmap(lambda p, ib: p[ib])(pn, idx_t)        # (B, K, N, c1_p)
    z0 = neigh + pcm[:, None, :, :]                         # (B, K, N, c1_p)
    cur = z0.reshape(m, c1_p)                               # rows in (b, k, n)

    # layer-0 BatchNorm2d stats (biased var) folded into scale/shift
    gsum = jnp.sum(cur, axis=0)
    gsumsq = jnp.sum(cur * cur, axis=0)
    scale, shift = _fold_bn(gsum, gsumsq, m, gamma0, beta0, c1, c1_p, eps)
    cin, cin_p = c1, c1_p

    # ---- layers 1..L-1: [prev BN + LeakyReLU] -> 1x1 conv -> stats ----------
    m_tile = _pick_tile(m, _SUBLANE, _MAX_TILE_ROWS)
    for layer in range(1, num_layers):
        w, gamma, beta = params[3 * layer:3 * layer + 3]
        cout = w.shape[1]
        cout_p = _round_up(cout, _LANE)
        wp = jnp.pad(w.astype(compute_dtype),
                     ((0, cin_p - cin), (0, cout_p - cout)))
        cur, stats = _mlp_stage(cur, wp, scale, shift, norm_act=True,
                                neg_slope=negative_slope, m_tile=m_tile,
                                want_stats=True)
        gsum = jnp.sum(stats[:, 0, :], axis=0)
        gsumsq = jnp.sum(stats[:, 1, :], axis=0)
        scale, shift = _fold_bn(gsum, gsumsq, m, gamma, beta, cout, cout_p, eps)
        cin, cin_p = cout, cout_p

    # ---- last layer's BN + LeakyReLU + max over K (Pallas) ------------------
    c_last, c_last_p = cin, cin_p
    n_tile = _pick_tile(n, _SUBLANE, _MAX_TILE_ROWS)
    num_n_tiles = n // n_tile
    z3 = cur.reshape(b * k, n, c_last_p)          # rows already (b, k, n) ordered
    out3 = pl.pallas_call(
        functools.partial(_final_max_kernel, neg_slope=negative_slope),
        grid=(b, num_n_tiles, k),                 # K last = reduction axis
        in_specs=[
            pl.BlockSpec((1, n_tile, c_last_p),
                         lambda bi, ni, ki: (bi * k + ki, ni, 0)),
            pl.BlockSpec((1, c_last_p), lambda bi, ni, ki: (0, 0)),
            pl.BlockSpec((1, c_last_p), lambda bi, ni, ki: (0, 0)),
        ],
        out_specs=pl.BlockSpec((1, n_tile, c_last_p),
                               lambda bi, ni, ki: (bi, ni, 0)),
        out_shape=jax.ShapeDtypeStruct((b, n, c_last_p), jnp.float32),
        compiler_params=pltpu.CompilerParams(
            dimension_semantics=("parallel", "parallel", "arbitrary"),
            vmem_limit_bytes=_VMEM_LIMIT),
    )(z3, scale, shift)

    # slice off channel padding; output tensor is small, so the final layout
    # transpose to (B, C_out, N) stays in the wrapper.
    return jnp.transpose(out3[:, :, :c_last], (0, 2, 1))


def init_params(key, c_in_points, mlp):
    """Conv2d(2C -> mlp[0]) -> ... weights (as (Cin, Cout)) + BN affine."""
    params = []
    c_in = 2 * c_in_points
    for c_out in mlp:
        key, k1, k2, k3 = jax.random.split(key, 4)
        w = jax.random.normal(k1, (c_in, c_out), jnp.float32) / jnp.sqrt(
            jnp.float32(c_in))
        gamma = 1.0 + 0.1 * jax.random.normal(k2, (1, c_out), jnp.float32)
        beta = 0.1 * jax.random.normal(k3, (1, c_out), jnp.float32)
        params += [w, gamma, beta]
        c_in = c_out
    return params


if __name__ == "__main__":
    B, C, N = 2, 4, 16          # batch, point-feature channels, num points
    KNN_K = 4                   # knnNum (<= N)
    MLP = [16, 32]              # DGCNNLayer(intputNum=C, mlp=MLP, knnNum=KNN_K)

    root = jax.random.PRNGKey(0)
    kx, kp = jax.random.split(root)
    x = jax.random.normal(kx, (B, C, N), jnp.float32)
    params = init_params(kp, C, MLP)

    out = dgcnn_layer_forward(x, params, KNN_K)
    out = jax.block_until_ready(out)

    assert out.shape == (B, MLP[-1], N), out.shape
    assert bool(jnp.all(jnp.isfinite(out)))
    print("KERNEL_OK")
</pallas_src>

<mosaic_0001>
module attributes {stable_mosaic.version = 11 : i64} {
  func.func @_knn_kernel(%arg0: i32, %arg1: i32, %arg2: memref<1x4x16xf32, #tpu.memory_space<vmem>>, %arg3: memref<1x4x16xf32, #tpu.memory_space<vmem>>, %arg4: memref<1x16x4xi32, #tpu.memory_space<vmem>>) attributes {dimension_semantics = [#tpu.dimension_semantics<parallel>, #tpu.dimension_semantics<parallel>], iteration_bounds = array<i64: 2, 1>, scalar_prefetch = 0 : i64, scratch_operands = 0 : i64, tpu.core_type = #tpu.core_type<tc>, window_params = [{transform_indices = @transform_0, window_bounds = array<i64: 1, 4, 16>}, {transform_indices = @transform_1, window_bounds = array<i64: 1, 4, 16>}, {transform_indices = @transform_2, window_bounds = array<i64: 1, 16, 4>}]} {
    %c0 = arith.constant 0 : index
    %c0_0 = arith.constant 0 : index
    %c0_1 = arith.constant 0 : index
    %0 = vector.load %arg2[%c0, %c0_0, %c0_1] : memref<1x4x16xf32, #tpu.memory_space<vmem>>, vector<1x4x16xf32>
    %1 = vector.shape_cast %0 : vector<1x4x16xf32> to vector<4x16xf32>
    %c0_2 = arith.constant 0 : index
    %c0_3 = arith.constant 0 : index
    %c0_4 = arith.constant 0 : index
    %2 = vector.load %arg3[%c0_2, %c0_3, %c0_4] : memref<1x4x16xf32, #tpu.memory_space<vmem>>, vector<1x4x16xf32>
    %3 = vector.shape_cast %2 : vector<1x4x16xf32> to vector<4x16xf32>
    %cst = arith.constant dense<0.000000e+00> : vector<16x16xf32>
    %4 = tpu.matmul %1, %3, %cst {dimension_numbers = #tpu.dot_dimension_numbers<[0], [0], [1], [1], [0, 1, 1, 1], [], []>} : vector<4x16xf32>, vector<4x16xf32>, vector<16x16xf32> -> vector<16x16xf32>
    %5 = arith.mulf %3, %3 : vector<4x16xf32>
    %cst_5 = arith.constant dense<0.000000e+00> : vector<16xf32>
    %6 = vector.multi_reduction <add>, %5, %cst_5 [0] : vector<4x16xf32> to vector<16xf32>
    %7 = vector.shape_cast %6 : vector<16xf32> to vector<1x16xf32>
    %cst_6 = arith.constant 2.000000e+00 : f32
    %8 = vector.broadcast %cst_6 : f32 to vector<16x16xf32>
    %9 = arith.mulf %8, %4 : vector<16x16xf32>
    %10 = vector.broadcast %7 : vector<1x16xf32> to vector<16x16xf32>
    %11 = arith.subf %9, %10 : vector<16x16xf32>
    %12 = tpu.iota {dimensions = array<i32: 1>} : vector<16x16xi32>
    %13 = tpu.iota {dimensions = array<i32: 1>} : vector<16x4xi32>
    %c0_i32 = arith.constant 0 : i32
    %14 = vector.broadcast %c0_i32 : i32 to vector<16x4xi32>
    %cst_7 = arith.constant dense<0xFF800000> : vector<16xf32>
    %15 = vector.multi_reduction <maximumf>, %11, %cst_7 [1] : vector<16x16xf32> to vector<16xf32>
    %16 = vector.shape_cast %15 : vector<16xf32> to vector<16x1xf32>
    %17 = vector.broadcast %16 : vector<16x1xf32> to vector<16x16xf32>
    %18 = arith.cmpf oeq, %11, %17 : vector<16x16xf32>
    %c16_i32 = arith.constant 16 : i32
    %19 = vector.broadcast %c16_i32 : i32 to vector<16x16xi32>
    %20 = arith.select %18, %12, %19 : vector<16x16xi1>, vector<16x16xi32>
    %cst_8 = arith.constant dense<2147483647> : vector<16xi32>
    %21 = vector.multi_reduction <minsi>, %20, %cst_8 [1] : vector<16x16xi32> to vector<16xi32>
    %22 = vector.shape_cast %21 : vector<16xi32> to vector<16x1xi32>
    %c0_i32_9 = arith.constant 0 : i32
    %23 = vector.broadcast %c0_i32_9 : i32 to vector<16x4xi32>
    %24 = arith.cmpi eq, %13, %23 : vector<16x4xi32>
    %25 = vector.shape_cast %22 : vector<16x1xi32> to vector<16x1xi32>
    %26 = vector.broadcast %25 : vector<16x1xi32> to vector<16x4xi32>
    %27 = arith.select %24, %26, %14 : vector<16x4xi1>, vector<16x4xi32>
    %28 = vector.broadcast %22 : vector<16x1xi32> to vector<16x16xi32>
    %29 = arith.cmpi eq, %12, %28 : vector<16x16xi32>
    %cst_10 = arith.constant -3.000000e+38 : f32
    %30 = vector.broadcast %cst_10 : f32 to vector<16x16xf32>
    %31 = arith.select %29, %30, %11 : vector<16x16xi1>, vector<16x16xf32>
    %cst_11 = arith.constant dense<0xFF800000> : vector<16xf32>
    %32 = vector.multi_reduction <maximumf>, %31, %cst_11 [1] : vector<16x16xf32> to vector<16xf32>
    %33 = vector.shape_cast %32 : vector<16xf32> to vector<16x1xf32>
    %34 = vector.broadcast %33 : vector<16x1xf32> to vector<16x16xf32>
    %35 = arith.cmpf oeq, %31, %34 : vector<16x16xf32>
    %c16_i32_12 = arith.constant 16 : i32
    %36 = vector.broadcast %c16_i32_12 : i32 to vector<16x16xi32>
    %37 = arith.select %35, %12, %36 : vector<16x16xi1>, vector<16x16xi32>
    %cst_13 = arith.constant dense<2147483647> : vector<16xi32>
    %38 = vector.multi_reduction <minsi>, %37, %cst_13 [1] : vector<16x16xi32> to vector<16xi32>
    %39 = vector.shape_cast %38 : vector<16xi32> to vector<16x1xi32>
    %c1_i32 = arith.constant 1 : i32
    %40 = vector.broadcast %c1_i32 : i32 to vector<16x4xi32>
    %41 = arith.cmpi eq, %13, %40 : vector<16x4xi32>
    %42 = vector.shape_cast %39 : vector<16x1xi32> to vector<16x1xi32>
    %43 = vector.broadcast %42 : vector<16x1xi32> to vector<16x4xi32>
    %44 = arith.select %41, %43, %27 : vector<16x4xi1>, vector<16x4xi32>
    %45 = vector.broadcast %39 : vector<16x1xi32> to vector<16x16xi32>
    %46 = arith.cmpi eq, %12, %45 : vector<16x16xi32>
    %cst_14 = arith.constant -3.000000e+38 : f32
    %47 = vector.broadcast %cst_14 : f32 to vector<16x16xf32>
    %48 = arith.select %46, %47, %31 : vector<16x16xi1>, vector<16x16xf32>
    %cst_15 = arith.constant dense<0xFF800000> : vector<16xf32>
    %49 = vector.multi_reduction <maximumf>, %48, %cst_15 [1] : vector<16x16xf32> to vector<16xf32>
    %50 = vector.shape_cast %49 : vector<16xf32> to vector<16x1xf32>
    %51 = vector.broadcast %50 : vector<16x1xf32> to vector<16x16xf32>
    %52 = arith.cmpf oeq, %48, %51 : vector<16x16xf32>
    %c16_i32_16 = arith.constant 16 : i32
    %53 = vector.broadcast %c16_i32_16 : i32 to vector<16x16xi32>
    %54 = arith.select %52, %12, %53 : vector<16x16xi1>, vector<16x16xi32>
    %cst_17 = arith.constant dense<2147483647> : vector<16xi32>
    %55 = vector.multi_reduction <minsi>, %54, %cst_17 [1] : vector<16x16xi32> to vector<16xi32>
    %56 = vector.shape_cast %55 : vector<16xi32> to vector<16x1xi32>
    %c2_i32 = arith.constant 2 : i32
    %57 = vector.broadcast %c2_i32 : i32 to vector<16x4xi32>
    %58 = arith.cmpi eq, %13, %57 : vector<16x4xi32>
    %59 = vector.shape_cast %56 : vector<16x1xi32> to vector<16x1xi32>
    %60 = vector.broadcast %59 : vector<16x1xi32> to vector<16x4xi32>
    %61 = arith.select %58, %60, %44 : vector<16x4xi1>, vector<16x4xi32>
    %62 = vector.broadcast %56 : vector<16x1xi32> to vector<16x16xi32>
    %63 = arith.cmpi eq, %12, %62 : vector<16x16xi32>
    %cst_18 = arith.constant -3.000000e+38 : f32
    %64 = vector.broadcast %cst_18 : f32 to vector<16x16xf32>
    %65 = arith.select %63, %64, %48 : vector<16x16xi1>, vector<16x16xf32>
    %cst_19 = arith.constant dense<0xFF800000> : vector<16xf32>
    %66 = vector.multi_reduction <maximumf>, %65, %cst_19 [1] : vector<16x16xf32> to vector<16xf32>
    %67 = vector.shape_cast %66 : vector<16xf32> to vector<16x1xf32>
    %68 = vector.broadcast %67 : vector<16x1xf32> to vector<16x16xf32>
    %69 = arith.cmpf oeq, %65, %68 : vector<16x16xf32>
    %c16_i32_20 = arith.constant 16 : i32
    %70 = vector.broadcast %c16_i32_20 : i32 to vector<16x16xi32>
    %71 = arith.select %69, %12, %70 : vector<16x16xi1>, vector<16x16xi32>
    %cst_21 = arith.constant dense<2147483647> : vector<16xi32>
    %72 = vector.multi_reduction <minsi>, %71, %cst_21 [1] : vector<16x16xi32> to vector<16xi32>
    %73 = vector.shape_cast %72 : vector<16xi32> to vector<16x1xi32>
    %c3_i32 = arith.constant 3 : i32
    %74 = vector.broadcast %c3_i32 : i32 to vector<16x4xi32>
    %75 = arith.cmpi eq, %13, %74 : vector<16x4xi32>
    %76 = vector.shape_cast %73 : vector<16x1xi32> to vector<16x1xi32>
    %77 = vector.broadcast %76 : vector<16x1xi32> to vector<16x4xi32>
    %78 = arith.select %75, %77, %61 : vector<16x4xi1>, vector<16x4xi32>
    %c0_22 = arith.constant 0 : index
    %c0_23 = arith.constant 0 : index
    %c0_24 = arith.constant 0 : index
    %79 = vector.load %arg4[%c0_22, %c0_23, %c0_24] : memref<1x16x4xi32, #tpu.memory_space<vmem>>, vector<1x16x4xi32>
    %80 = vector.shape_cast %79 : vector<1x16x4xi32> to vector<16x4xi32>
    %81 = vector.shape_cast %78 : vector<16x4xi32> to vector<1x16x4xi32>
    tpu.vector_store %arg4[%c0_22, %c0_23, %c0_24], %81 {strides = array<i32>} : memref<1x16x4xi32, #tpu.memory_space<vmem>>, vector<1x16x4xi32>,
    return
  }
  func.func @transform_0(%arg0: i32, %arg1: i32) -> (i32, i32, i32) {
    %c0_i32 = arith.constant 0 : i32
    %c0_i32_0 = arith.constant 0 : i32
    return %arg0, %c0_i32, %arg1 : i32, i32, i32
  }
  func.func @transform_1(%arg0: i32, %arg1: i32) -> (i32, i32, i32) {
    %c0_i32 = arith.constant 0 : i32
    %c0_i32_0 = arith.constant 0 : i32
    %c0_i32_1 = arith.constant 0 : i32
    return %arg0, %c0_i32, %c0_i32_0 : i32, i32, i32
  }
  func.func @transform_2(%arg0: i32, %arg1: i32) -> (i32, i32, i32) {
    %c0_i32 = arith.constant 0 : i32
    %c0_i32_0 = arith.constant 0 : i32
    return %arg0, %arg1, %c0_i32 : i32, i32, i32
  }
}

</mosaic_0001>

<bundles_post_ra>
// kernel: tpu_custom_call.1
= control target key start
LH: loop header
LB: loop body
LE: loop exit
PB: predicated region body
PF: predicated region fallthrough
CT: control target
= control target key end

     0   :  { %7 = vsyncpa [#allocation3], 0  ;;  %s1095_s0 = inlined_call_operand.hbm [shape: f32[2,4,16], index: 0, kind: input, shape index: {}]   ;;  %s1096_s1 = inlined_call_operand.hbm [shape: f32[2,4,16], index: 1, kind: input, shape index: {}]   ;;  %s1097_s2 = inlined_call_operand.vmem [shape: s32[2,16,4], index: 2, kind: output, shape index: {}]  }
   0x1   :  { %9 = vsyncpa [#allocation3 + $0x1], 0 }
   0x2   :  { %10 = vsyncpa [#allocation5], 0 }
   0x3   :  { %12 = vsyncpa [#allocation5 + $0x1], 0  ;;  %s883_s9 = smov 0   ;;  %s885_s10 = smov 0  }
   0x4   :  { %s887_s11 = smov 0   ;;  %s889_s12 = smov 0  }
   0x5   :  { %s891_s13 = smov 0   ;;  %s893_s14 = smov 0  }
   0x6 LB: > { %s662_s15 = sadd.s32 4294967295, %s864_s14   ;;  %s30_s16 = sadd.s32 1, %s860_s13  ;;  %s864_s14 = sphi %s893_s14, %s18_s14   ;;  %s860_s13 = sphi %s891_s13, %s1111_s13   ;;  %s856_s12 = sphi %s889_s12, %s1110_s12   ;;  %s852_s11 = sphi %s887_s11, %s1109_s11   ;;  %s848_s10 = sphi %s885_s10, %s1108_s10   ;;  %s844_s9 = sphi %s883_s9, %s1107_s9  }
   0x7   : > { %p32_p0 = scmp.ge.s32.totalorder %s30_s16, 2  ;;  %s39_s17 = sadd.s32 1, %s852_s11 }
   0x8   : > { %p46_p1 = scmp.ne.s32.totalorder %s852_s11, %s848_s10  ;;  %p47_p2 = scmp.eq.s32.totalorder %s864_s14, 0 }
   0x9   : > { %s1113_s16 = smov (%p32_p0, %s30_s16), 0  ;;  %p52_p4 = scmp.ne.s32.totalorder %s848_s10, %s844_s9 }
   0xa   : > { %p919_p3 = por %p47_p2, %p46_p1  ;;  %s34_s19 = ssub.s32 %s860_s13, %s1113_s16 }
   0xb   : > { %p53_p5 = scmp.eq.s32.totalorder %s662_s15, 0  ;;  %p37_p6 = scmp.eq.s32.totalorder %s34_s19, 0 }
   0xc   : > { %p700_p8 = scmp.lt.s32.totalorder %s864_s14, 2  ;;  %s935_s22 = sand.u32 1, %s852_s11  }
   0xd   : > { %p926_p7 = por %p53_p5, %p52_p4  ;;  %s667_s23 = sshll.u32 %s860_s13, 6 }
   0xe   : > { %s932_s21 = scalar_select %p37_p6, %s852_s11, %s39_s17  }
   0xf   : > { %s1100_s20 = scalar_select %p926_p7, 1, 0 }
  0x10   : > { %s666_s24 = sshll.u32 %s935_s22, 2  ;;  %s944_s27 = scalar_lea.hbm %s1095_s0, %s667_s23 }
  0x11   : > { %s134_s28 = scalar_lea.vmem [#allocation2], %s666_s24  ;;  %p950_p9 = pnand %p700_p8, %p919_p3 }
  0x12   : > { %s142_s29 = sshll.u32 %s134_s28, 4  ;;  %s131_s3 = scalar_lea.sflag [#allocation3], %s935_s22  ;;  %s954_s29 = int_to_ptr.vmem [resolvable:$true] %s142_s29 }
  0x13   : > { %s750_s4 = scalar_lea.hbm %s944_s27, 64  ;;  %p752_p13 = pneg %p950_p9 }
  0x14   : > { %p751_p12 = scmp.ne.s32.totalorder %s944_s27, %s750_s4  ;;  %s755_s7 = scalar_lea.hbm %s1095_s0, 128 }
  0x15   : > { %p756_p2 = scmp.lt.u32.totalorder %s944_s27, %s1095_s0  ;;  %p757_p3 = scmp.lt.u32.totalorder %s755_s7, %s750_s4 }
  0x16   : > { %p753_p0 = pnand %p752_p13, %p751_p12  ;;  %p759_p5 = scmp.lt.u32.totalorder %s750_s4, %s944_s27 }
  0x17   : > { %p758_p4 = por %p757_p3, %p756_p2 }
  0x18   : > { %p754_p1 = pneg %p753_p0 }
  0x19   : > { %p760_p6 = por %p759_p5, %p758_p4 }
  0x1b   : > { %p761_p8 = pnand %p760_p6, %p754_p1 }
  0x1d   : > { %764 = shalt.err (!%p761_p8)
}
  0x1e   : > { %s765_s15 = scalar_lea.vmem %s954_s29, 64  ;;  %s866_s17 = smov [#allocation2]  }
  0x1f   : > { %p766_p12 = scmp.ne.s32.totalorder %s954_s29, %s765_s15  ;;  %s770_s18 = sshll.u32 %s866_s17, 4  ;;  %s771_s18 = int_to_ptr.vmem [resolvable:$false] %s770_s18 }
  0x20   : > { %s772_s19 = scalar_lea.vmem %s771_s18, 128  ;;  %p773_p11 = scmp.lt.s32.totalorder %s954_s29, %s771_s18 }
  0x21   : > { %p768_p0 = pnand %p766_p12, %p752_p13  ;;  %p774_p2 = scmp.lt.s32.totalorder %s772_s19, %s765_s15 }
  0x23   : > { %p769_p10 = pneg %p768_p0  ;;  %p775_p3 = por %p774_p2, %p773_p11 }
  0x25   : > { %p776_p4 = pnand %p775_p3, %p769_p10 }
  0x27   : > { %779 = shalt.err (!%p776_p4)
}
  0x28   : > { %696 = dma.hbm_to_vmem [thread:$0]  (!%p950_p9), %s944_s27, 64, %s954_s29, %s131_s3  }
  0x29   : > { %p1102_p1 = scmp.lt.s32.totalorder %s864_s14, 3  ;;  %p1103_p5 = scmp.ge.s32.totalorder %s864_s14, 1 }
  0x2a   : > { %s997_s4 = scalar_lea.hbm %s1096_s1, %s667_s23  ;;  %s153_s5 = scalar_lea.vmem [#allocation4], %s666_s24 }
  0x2b   : > { %p988_p6 = pnand %p1103_p5, %p1102_p1  ;;  %s160_s6 = sshll.u32 %s153_s5, 4  ;;  %s161_s6 = int_to_ptr.vmem [resolvable:$true] %s160_s6 }
  0x2c   : > { %s150_s27 = scalar_lea.sflag [#allocation5], %s935_s22  ;;  %s780_s29 = scalar_lea.hbm %s997_s4, 64 }
  0x2d   : > { %s1104_s25 = scalar_select %p988_p6, 1, 0 }
  0x2e   : > { %p781_p10 = scmp.ne.s32.totalorder %s997_s4, %s780_s29  ;;  %s785_s23 = scalar_lea.hbm %s1096_s1, 128 }
  0x2f   : > { %p786_p12 = scmp.lt.u32.totalorder %s997_s4, %s1096_s1  ;;  %p787_p0 = scmp.lt.u32.totalorder %s785_s23, %s780_s29 }
  0x30   : > { %p783_p11 = pnand %p781_p10, %p752_p13  ;;  %p789_p3 = scmp.lt.u32.totalorder %s780_s29, %s997_s4 }
  0x31   : > { %p788_p2 = por %p787_p0, %p786_p12 }
  0x32   : > { %p784_p8 = pneg %p783_p11 }
  0x33   : > { %p790_p4 = por %p789_p3, %p788_p2 }
  0x35   : > { %p791_p1 = pnand %p790_p4, %p784_p8 }
  0x37   : > { %794 = shalt.err (!%p791_p1)
}
  0x38   : > { %s795_s22 = scalar_lea.vmem %s161_s6, 64  ;;  %s867_s24 = smov [#allocation4]  }
  0x39   : > { %p796_p5 = scmp.ne.s32.totalorder %s161_s6, %s795_s22  ;;  %s800_s15 = sshll.u32 %s867_s24, 4  ;;  %s801_s15 = int_to_ptr.vmem [resolvable:$false] %s800_s15 }
  0x3a   : > { %s802_s17 = scalar_lea.vmem %s801_s15, 128  ;;  %p803_p7 = scmp.lt.s32.totalorder %s161_s6, %s801_s15 }
  0x3b   : > { %p798_p10 = pnand %p796_p5, %p752_p13  ;;  %p804_p6 = scmp.lt.s32.totalorder %s802_s17, %s795_s22 }
  0x3d   : > { %p799_p11 = pneg %p798_p10  ;;  %p805_p0 = por %p804_p6, %p803_p7 }
  0x3f   : > { %p806_p12 = pnand %p805_p0, %p799_p11 }
  0x41   : > { %809 = shalt.err (!%p806_p12)
}
  0x42   : > { %699 = dma.hbm_to_vmem [thread:$0]  (!%p950_p9), %s997_s4, 64, %s161_s6, %s150_s27  }
  0x43   : > { %p1105_p8 = scmp.ne.s32.totalorder %s1104_s25, 0 }
  0x44   : > { %s171_s18 = sand.u32 (!%p1105_p8), 1, %s848_s10   ;;  %p1106_p13 = scmp.ne.s32.totalorder (!%p1105_p8), %s1100_s20, 0 }
  0x45   : > { %169 = sbr.rel (%p1105_p8) target bundleno = 2202 (0x89a), region = 28  ;;  %s671_s19 = sshll.u32 (!%p1105_p8), %s171_s18, 2 }
  0x46   : > { %s172_s26 = scalar_lea.sflag (!%p1105_p8), [#allocation3], %s171_s18  ;;  %s175_s28 = scalar_lea.vmem (!%p1105_p8), [#allocation2], %s671_s19 }
  0x4c   : > { %835 = dma.done.wait (%p1106_p13), %s172_s26, 64  }
  0x4d   : > { %837 = vsyncadd (%p1106_p13), %s172_s26, 4294967232  ;;  %s181_s5 = scalar_lea.sflag [#allocation5], %s171_s18  ;;  %s184_s29 = scalar_lea.vmem [#allocation4], %s671_s19 }
  0x4e   : > { %839 = dma.done.wait (%p1106_p13), %s181_s5, 64  }
  0x4f   : > { %841 = vsyncadd (%p1106_p13), %s181_s5, 4294967232  ;;  %v224_v0 = vld [vmem:[%s175_s28] sm:$0xf]  ;;  %v225_v1 = vld [vmem:[%s184_s29] sm:$0xf]  ;;  %vm265_vm0 = vcmask 1043456   ;;  %v357_v20 = vlaneseq }
  0x50   : > { %226 = vxpose.xlu0.b32.start.end [1/1] (short) (narrow) %v224_v0, 16  ;;  %684 = vmatprep.subr.msk.mxu0 %vm265_vm0, %v225_v1  ;;  %vm258_vm1 = vcmask 31744   ;;  %v344_v4 = vmul.f32 %v225_v1, %v225_v1  ;;  %vm345_vm2 = vcmask 125952   ;;  %vm359_vm3 = vcmask 130048   ;;  %p215_p7 = scmp.lt.s32.totalorder %s856_s12, 1 }
  0x51   : > { %685 = vmatpush3.msk.msra.mxu0 %vm265_vm0, %v225_v1  ;;  %v1036_v21 = vand.u32 127, %v357_v20 }
  0x52   : > { %v346_v5 = vsel %vm345_vm2, %v344_v4, 0.0  ;;  %s1115_s12 = smov (!%p215_p7, %s856_s12), 1 }
  0x53   : > { %v347_v6 = vrot.slane %v346_v5, 4  ;;  %vm400_vm14 = vcmp.eq.s32.totalorder %v1036_v21, 0  ;;  %vm447_vm15 = vcmp.eq.s32.totalorder %v1036_v21, 1  ;;  %s680_s20 = sshll.u32 %s1115_s12, 4 }
  0x54   : > { %s222_s4 = scalar_lea.vmem %s1097_s2, %s680_s20 }
  0x55   : > { %v348_v7 = vadd.f32 %v347_v6, %v346_v5 }
  0x57   : > { %v349_v8 = vrot.slane %v348_v7, 2 }
  0x59   : > { %v350_v9 = vadd.f32 %v349_v8, %v348_v7 }
  0x5b   : > { %v351_v10 = vrot.slane %v350_v9, 1 }
  0x5d   : > { %v352_v11 = vadd.f32 %v351_v10, %v350_v9 }
  0xd0   : > { %v242_v2 = vpop.trf.xlu0 }
  0xd1   : > { %686 = vmatprep.mubr.msk.f32.mxu0 %vm258_vm1, %v242_v2 }
  0xd4   : > { %v243_v3 = vpop.trf.xlu0 }
  0xd5   : > { %687 = vmatmul.mubr.msk.f32.vlgmr.msra.gmra.mrb[0].mxu0 %vm258_vm1, %v243_v3 }
 0x1a8   : > { %v688_v12 = vpop.f32.mrb[0].mxu0 }
 0x1a9   : > { %v354_v13 = vmul.f32 2.0, %v688_v12  ;;  %v335_v14 = vpop.f32.mrb[1].mxu0 }
 0x1aa   : > { %v353_v15 = vmul.f32 2.0, %v335_v14 }
 0x1ab   : > { %v356_v16 = vsub.f32 %v354_v13, %v352_v11 }
 0x1ac   : > { %v355_v17 = vsub.f32 %v353_v15, %v352_v11 }
 0x1ad   : > { %v363_v18 = vsel %vm359_vm3, %v356_v16, -inf }
 0x1ae   : > { %364 = vmax.xlane.f32.xlu1 %v363_v18  ;;  %v360_v19 = vsel %vm359_vm3, %v355_v17, -inf }
 0x1af   : > { %361 = vmax.xlane.f32.xlu0 %v360_v19 }
 0x23b   : > { %v365_v22 = vpop.xlane.xlu1 %364 }
 0x23c   : > { %vm367_vm4 = vcmp.eq.f32.partialorder %v356_v16, %v365_v22  ;;  %v362_v23 = vpop.xlane.xlu0 %361 }
 0x23d   : > { %v369_v24 = vsel %vm367_vm4, %v1036_v21, 16  ;;  %vm366_vm5 = vcmp.eq.f32.partialorder %v355_v17, %v362_v23 }
 0x23e   : > { %v368_v25 = vsel %vm366_vm5, %v1036_v21, 16  ;;  %v385_v26 = vsel %vm359_vm3, %v369_v24, 2147483647 }
 0x23f   : > { %v370_v27 = vsel %vm359_vm3, %v368_v25, 2147483647  ;;  %v387_v30 = vshra.s32 %v385_v26, 16  ;;  %v386_v35 = vand.u32 65535, %v385_v26 }
 0x240   : > { %v372_v28 = vshra.s32 %v370_v27, 16  ;;  %v371_v32 = vand.u32 65535, %v370_v27 }
 0x241   : > { %v389_v31 = vcvt.s32.f32 %v387_v30  ;;  %v388_v38 = vcvt.s32.f32 %v386_v35 }
 0x242   : > { %v374_v29 = vcvt.s32.f32 %v372_v28  ;;  %v373_v34 = vcvt.s32.f32 %v371_v32 }
 0x244   : > { %375 = vmin.xlane.f32.xlu1 %v374_v29 }
 0x248   : > { %390 = vmin.xlane.f32.xlu1 %v389_v31 }
 0x2d1   : > { %v376_v33 = vpop.xlane.xlu1 %375 }
 0x2d2   : > { %vm377_vm6 = vcmp.eq.f32.partialorder %v374_v29, %v376_v33  ;;  %v382_v40 = vcvt.f32.s32 %v376_v33 }
 0x2d3   : > { %v378_v36 = vsel %vm377_vm6, %v373_v34, inf }
 0x2d4   : > { %379 = vmin.xlane.f32.xlu1 %v378_v36  ;;  %v383_v42 = vshll.u32 %v382_v40, 16 }
 0x2d5   : > { %v391_v37 = vpop.xlane.xlu1 %390 }
 0x2d6   : > { %vm392_vm7 = vcmp.eq.f32.partialorder %v389_v31, %v391_v37  ;;  %v397_v43 = vcvt.f32.s32 %v391_v37 }
 0x2d7   : > { %v393_v39 = vsel %vm392_vm7, %v388_v38, inf }
 0x2d8   : > { %394 = vmin.xlane.f32.xlu1 %v393_v39  ;;  %v398_v47 = vshll.u32 %v397_v43, 16 }
 0x361   : > { %v380_v41 = vpop.xlane.xlu1 %379 }
 0x362   : > { %v381_v44 = vcvt.f32.s32 %v380_v41 }
 0x364   : > { %v384_v45 = vadd.s32 %v383_v42, %v381_v44 }
 0x365   : > { %v395_v46 = vpop.xlane.xlu1 %394 }
 0x366   : > { %v396_v48 = vcvt.f32.s32 %v395_v46  ;;  %vm403_vm8 = vcmp.eq.s32.totalorder %v1036_v21, %v384_v45  ;;  %v401_v14 = vsel %vm400_vm14, %v384_v45, 0 }
 0x367   : > { %v405_v49 = vsel %vm403_vm8, -3e+38, %v355_v17  ;;  %vm494_vm8 = vcmp.eq.s32.totalorder %v1036_v21, 2 }
 0x368   : > { %v399_v50 = vadd.s32 %v398_v47, %v396_v48  ;;  %v407_v51 = vsel %vm359_vm3, %v405_v49, -inf }
 0x369   : > { %408 = vmax.xlane.f32.xlu1 %v407_v51 }
 0x36a   : > { %vm404_vm9 = vcmp.eq.s32.totalorder %v1036_v21, %v399_v50  ;;  %v402_v23 = vsel %vm400_vm14, %v399_v50, 0 }
 0x36b   : > { %v406_v52 = vsel %vm404_vm9, -3e+38, %v356_v16 }
 0x36c   : > { %v410_v53 = vsel %vm359_vm3, %v406_v52, -inf }
 0x36d   : > { %411 = vmax.xlane.f32.xlu1 %v410_v53 }
 0x3f6   : > { %v409_v54 = vpop.xlane.xlu1 %408 }
 0x3f7   : > { %vm413_vm10 = vcmp.eq.f32.partialorder %v405_v49, %v409_v54 }
 0x3f8   : > { %v415_v55 = vsel %vm413_vm10, %v1036_v21, 16 }
 0x3f9   : > { %v417_v56 = vsel %vm359_vm3, %v415_v55, 2147483647 }
 0x3fa   : > { %v412_v57 = vpop.xlane.xlu1 %411  ;;  %v419_v58 = vshra.s32 %v417_v56, 16  ;;  %v418_v0 = vand.u32 65535, %v417_v56 }
 0x3fb   : > { %vm414_vm11 = vcmp.eq.f32.partialorder %v406_v52, %v412_v57 }
 0x3fc   : > { %v416_v59 = vsel %vm414_vm11, %v1036_v21, 16  ;;  %v421_v60 = vcvt.s32.f32 %v419_v58  ;;  %v420_v2 = vcvt.s32.f32 %v418_v0 }
 0x3fd   : > { %v432_v61 = vsel %vm359_vm3, %v416_v59, 2147483647 }
 0x3fe   : > { %422 = vmin.xlane.f32.xlu1 %v421_v60  ;;  %v434_v62 = vshra.s32 %v432_v61, 16  ;;  %v433_v3 = vand.u32 65535, %v432_v61 }
 0x400   : > { %v436_v63 = vcvt.s32.f32 %v434_v62  ;;  %v435_v6 = vcvt.s32.f32 %v433_v3 }
 0x402   : > { %437 = vmin.xlane.f32.xlu1 %v436_v63 }
 0x48b   : > { %v423_v1 = vpop.xlane.xlu1 %422 }
 0x48c   : > { %vm424_vm12 = vcmp.eq.f32.partialorder %v421_v60, %v423_v1  ;;  %v429_v8 = vcvt.f32.s32 %v423_v1 }
 0x48d   : > { %v425_v4 = vsel %vm424_vm12, %v420_v2, inf }
 0x48e   : > { %426 = vmin.xlane.f32.xlu1 %v425_v4  ;;  %v430_v10 = vshll.u32 %v429_v8, 16 }
 0x48f   : > { %v438_v5 = vpop.xlane.xlu1 %437 }
 0x490   : > { %vm439_vm13 = vcmp.eq.f32.partialorder %v436_v63, %v438_v5  ;;  %v444_v11 = vcvt.f32.s32 %v438_v5 }
 0x491   : > { %v440_v7 = vsel %vm439_vm13, %v435_v6, inf }
 0x492   : > { %441 = vmin.xlane.f32.xlu1 %v440_v7  ;;  %v445_v16 = vshll.u32 %v444_v11, 16 }
 0x51b   : > { %v427_v9 = vpop.xlane.xlu1 %426 }
 0x51c   : > { %v428_v12 = vcvt.f32.s32 %v427_v9 }
 0x51e   : > { %v431_v13 = vadd.s32 %v430_v10, %v428_v12 }
 0x51f   : > { %v442_v15 = vpop.xlane.xlu1 %441 }
 0x520   : > { %v448_v17 = vsel %vm447_vm15, %v431_v13, %v401_v14  ;;  %v443_v18 = vcvt.f32.s32 %v442_v15  ;;  %vm450_vm0 = vcmp.eq.s32.totalorder %v1036_v21, %v431_v13 }
 0x521   : > { %v452_v19 = vsel %vm450_vm0, -3e+38, %v405_v49 }
 0x522   : > { %v446_v20 = vadd.s32 %v445_v16, %v443_v18  ;;  %v454_v22 = vsel %vm359_vm3, %v452_v19, -inf }
 0x523   : > { %455 = vmax.xlane.f32.xlu1 %v454_v22 }
 0x524   : > { %v449_v24 = vsel %vm447_vm15, %v446_v20, %v402_v23  ;;  %vm451_vm2 = vcmp.eq.s32.totalorder %v1036_v21, %v446_v20 }
 0x525   : > { %v453_v25 = vsel %vm451_vm2, -3e+38, %v406_v52 }
 0x526   : > { %v457_v26 = vsel %vm359_vm3, %v453_v25, -inf }
 0x527   : > { %458 = vmax.xlane.f32.xlu1 %v457_v26 }
 0x5b0   : > { %v456_v27 = vpop.xlane.xlu1 %455 }
 0x5b1   : > { %vm460_vm4 = vcmp.eq.f32.partialorder %v452_v19, %v456_v27 }
 0x5b2   : > { %v462_v28 = vsel %vm460_vm4, %v1036_v21, 16 }
 0x5b3   : > { %v464_v29 = vsel %vm359_vm3, %v462_v28, 2147483647 }
 0x5b4   : > { %v459_v30 = vpop.xlane.xlu1 %458  ;;  %v466_v31 = vshra.s32 %v464_v29, 16  ;;  %v465_v37 = vand.u32 65535, %v464_v29 }
 0x5b5   : > { %vm461_vm5 = vcmp.eq.f32.partialorder %v453_v25, %v459_v30 }
 0x5b6   : > { %v463_v32 = vsel %vm461_vm5, %v1036_v21, 16  ;;  %v468_v33 = vcvt.s32.f32 %v466_v31  ;;  %v467_v39 = vcvt.s32.f32 %v465_v37 }
 0x5b7   : > { %v479_v34 = vsel %vm359_vm3, %v463_v32, 2147483647 }
 0x5b8   : > { %469 = vmin.xlane.f32.xlu1 %v468_v33  ;;  %v481_v35 = vshra.s32 %v479_v34, 16  ;;  %v480_v40 = vand.u32 65535, %v479_v34 }
 0x5ba   : > { %v483_v36 = vcvt.s32.f32 %v481_v35  ;;  %v482_v43 = vcvt.s32.f32 %v480_v40 }
 0x5bc   : > { %484 = vmin.xlane.f32.xlu0 %v483_v36 }
 0x645   : > { %v470_v38 = vpop.xlane.xlu1 %469 }
 0x646   : > { %vm471_vm6 = vcmp.eq.f32.partialorder %v468_v33, %v470_v38  ;;  %v476_v45 = vcvt.f32.s32 %v470_v38 }
 0x647   : > { %v472_v41 = vsel %vm471_vm6, %v467_v39, inf }
 0x648   : > { %473 = vmin.xlane.f32.xlu1 %v472_v41  ;;  %v477_v47 = vshll.u32 %v476_v45, 16 }
 0x649   : > { %v485_v42 = vpop.xlane.xlu0 %484 }
 0x64a   : > { %vm486_vm7 = vcmp.eq.f32.partialorder %v483_v36, %v485_v42  ;;  %v491_v48 = vcvt.f32.s32 %v485_v42 }
 0x64b   : > { %v487_v44 = vsel %vm486_vm7, %v482_v43, inf }
 0x64c   : > { %488 = vmin.xlane.f32.xlu0 %v487_v44  ;;  %v492_v52 = vshll.u32 %v491_v48, 16 }
 0x6d5   : > { %v474_v46 = vpop.xlane.xlu1 %473 }
 0x6d6   : > { %v475_v49 = vcvt.f32.s32 %v474_v46 }
 0x6d8   : > { %v478_v50 = vadd.s32 %v477_v47, %v475_v49 }
 0x6d9   : > { %v489_v51 = vpop.xlane.xlu0 %488 }
 0x6da   : > { %v495_v53 = vsel %vm494_vm8, %v478_v50, %v448_v17  ;;  %v490_v54 = vcvt.f32.s32 %v489_v51  ;;  %vm497_vm9 = vcmp.eq.s32.totalorder %v1036_v21, %v478_v50 }
 0x6db   : > { %v499_v55 = vsel %vm497_vm9, -3e+38, %v452_v19 }
 0x6dc   : > { %v493_v56 = vadd.s32 %v492_v52, %v490_v54  ;;  %v501_v57 = vsel %vm359_vm3, %v499_v55, -inf }
 0x6dd   : > { %502 = vmax.xlane.f32.xlu1 %v501_v57 }
 0x6de   : > { %v496_v58 = vsel %vm494_vm8, %v493_v56, %v449_v24  ;;  %vm498_vm10 = vcmp.eq.s32.totalorder %v1036_v21, %v493_v56 }
 0x6df   : > { %v500_v59 = vsel %vm498_vm10, -3e+38, %v453_v25 }
 0x6e0   : > { %v504_v60 = vsel %vm359_vm3, %v500_v59, -inf }
 0x6e1   : > { %505 = vmax.xlane.f32.xlu0 %v504_v60 }
 0x76a   : > { %v503_v61 = vpop.xlane.xlu1 %502 }
 0x76b   : > { %vm507_vm11 = vcmp.eq.f32.partialorder %v499_v55, %v503_v61 }
 0x76c   : > { %v509_v62 = vsel %vm507_vm11, %v1036_v21, 16 }
 0x76d   : > { %v511_v63 = vsel %vm359_vm3, %v509_v62, 2147483647 }
 0x76e   : > { %v506_v0 = vpop.xlane.xlu0 %505  ;;  %v513_v1 = vshra.s32 %v511_v63, 16  ;;  %v512_v7 = vand.u32 65535, %v511_v63 }
 0x76f   : > { %vm508_vm12 = vcmp.eq.f32.partialorder %v500_v59, %v506_v0 }
 0x770   : > { %v510_v2 = vsel %vm508_vm12, %v1036_v21, 16  ;;  %v515_v3 = vcvt.s32.f32 %v513_v1  ;;  %v514_v9 = vcvt.s32.f32 %v512_v7 }
 0x771   : > { %v526_v4 = vsel %vm359_vm3, %v510_v2, 2147483647  ;;  %vm541_vm3 = vcmp.eq.s32.totalorder %v1036_v21, 3 }
 0x772   : > { %516 = vmin.xlane.f32.xlu1 %v515_v3  ;;  %v528_v5 = vshra.s32 %v526_v4, 16  ;;  %v527_v10 = vand.u32 65535, %v526_v4 }
 0x774   : > { %v530_v6 = vcvt.s32.f32 %v528_v5  ;;  %v529_v13 = vcvt.s32.f32 %v527_v10 }
 0x776   : > { %531 = vmin.xlane.f32.xlu0 %v530_v6 }
 0x7ff   : > { %v517_v8 = vpop.xlane.xlu1 %516 }
 0x800   : > { %vm518_vm13 = vcmp.eq.f32.partialorder %v515_v3, %v517_v8  ;;  %v523_v15 = vcvt.f32.s32 %v517_v8 }
 0x801   : > { %v519_v11 = vsel %vm518_vm13, %v514_v9, inf }
 0x802   : > { %520 = vmin.xlane.f32.xlu1 %v519_v11  ;;  %v524_v17 = vshll.u32 %v523_v15, 16 }
 0x803   : > { %v532_v12 = vpop.xlane.xlu0 %531 }
 0x804   : > { %vm533_vm14 = vcmp.eq.f32.partialorder %v530_v6, %v532_v12  ;;  %v538_v18 = vcvt.f32.s32 %v532_v12 }
 0x805   : > { %v534_v14 = vsel %vm533_vm14, %v529_v13, inf }
 0x806   : > { %535 = vmin.xlane.f32.xlu0 %v534_v14  ;;  %v539_v23 = vshll.u32 %v538_v18, 16 }
 0x88f   : > { %v521_v16 = vpop.xlane.xlu1 %520 }
 0x890   : > { %v522_v19 = vcvt.f32.s32 %v521_v16 }
 0x892   : > { %v525_v20 = vadd.s32 %v524_v17, %v522_v19 }
 0x893   : > { %v536_v22 = vpop.xlane.xlu0 %535 }
 0x894   : > { %v542_v24 = vsel %vm541_vm3, %v525_v20, %v495_v53  ;;  %v537_v25 = vcvt.f32.s32 %v536_v22 }
 0x895   : > { %544 = vst.msk [vmem:[%s222_s4] sm:$0xff] %vm258_vm1, %v542_v24 }
 0x896   : > { %v540_v26 = vadd.s32 %v539_v23, %v537_v25 }
 0x898   : > { %v543_v27 = vsel %vm541_vm3, %v540_v26, %v496_v58 }
 0x899   : > { %545 = vst.msk [vmem:[%s222_s4 + $0x8] sm:$0xff] %vm258_vm1, %v543_v27 }
 0x89a PF: > { %s18_s14 = sadd.s32 1, %s864_s14   ;;  %s1107_s9 = smov %s848_s10 }
 0x89b   : > { %p15_p9 = scmp.ge.s32.totalorder %s18_s14, 4   ;;  %s1108_s10 = smov %s852_s11 }
 0x89c   : > { %s1109_s11 = smov %s932_s21  ;;  %s1110_s12 = smov %s860_s13 }
 0x89d   : > { %s1111_s13 = smov %s1113_s16  ;;  %17 = sbr.rel (!%p15_p9) target bundleno = 6 (0x6), region = 81 }
 0x8a4   :  { %576 = vsyncpa [#allocation3], 1 }
 0x8a5   :  { %578 = vsyncpa [#allocation3 + $0x1], 1 }
 0x8a6   :  { %579 = vsyncpa [#allocation5], 1 }
 0x8a7   :  { %581 = vsyncpa [#allocation5 + $0x1], 1 }

</bundles_post_ra>
